<compile_context>
chip_gen: v7x
topology: tpu7x:2x2x1
jax: 0.10.0
libtpu: 0.0.40
codegen_flags: <defaults>
</compile_context>

<pallas_src>
import functools

import jax
import jax.numpy as jnp
from jax import lax
from jax.experimental import pallas as pl
from jax.experimental.pallas import tpu as pltpu


_PACKED_CLASS_LIMIT = 32   # single packed (C, T) pass when C <= this
_CLASS_CHUNK = 8           # f32 sublane rows per vreg for the streamed path


def _ce_kernel(logits_ref, tgt_ref, out_ref, *, hw, tile_hw):
    """One (batch, hw-tile) grid step.

    logits_ref: (C, TILE_HW)  native dtype
    tgt_ref:    (1, TILE_HW)  int32
    out_ref:    (1, TILE_HW)  f32 per-pixel loss (padding lanes written as 0)
    """
    c, tile = logits_ref.shape
    tgt = tgt_ref[...]                                         # (1, T) int32

    if c <= _PACKED_CLASS_LIMIT:
        # Packed single pass: full-sublane-density vregs; the class
        # reductions map to XLU sublane reduces (separate VLIW slot from the
        # VPU/EUP elementwise work).
        x = logits_ref[...].astype(jnp.float32)                # (C, T)
        m = jnp.max(x, axis=0, keepdims=True)                  # (1, T)
        s = jnp.sum(jnp.exp(x - m), axis=0, keepdims=True)     # (1, T)
        cls = lax.broadcasted_iota(jnp.int32, (c, tile), 0)    # (C, T)
        picked = jnp.sum(jnp.where(cls == tgt, x, 0.0),
                         axis=0, keepdims=True)                # (1, T)
    else:
        # Streamed online-LSE over class chunks: keeps live f32 intermediates
        # at ~_CLASS_CHUNK rows regardless of C (no spill blow-up for large
        # segmentation heads).
        m = jnp.full((1, tile), -jnp.inf, jnp.float32)
        s = jnp.zeros((1, tile), jnp.float32)
        picked = jnp.zeros((1, tile), jnp.float32)
        for start in range(0, c, _CLASS_CHUNK):
            size = min(_CLASS_CHUNK, c - start)
            xc = logits_ref[start:start + size, :].astype(jnp.float32)
            m_new = jnp.maximum(m, jnp.max(xc, axis=0, keepdims=True))
            s = s * jnp.exp(m - m_new) + jnp.sum(
                jnp.exp(xc - m_new), axis=0, keepdims=True)
            cls = lax.broadcasted_iota(jnp.int32, (size, tile), 0) + start
            picked = picked + jnp.sum(jnp.where(cls == tgt, xc, 0.0),
                                      axis=0, keepdims=True)
            m = m_new

    lse = m + jnp.log(s)                                       # (1, T)
    result = lse - picked                                      # per-pixel NLL

    if hw % tile_hw == 0:
        # Every tile is full; no masking anywhere.
        out_ref[...] = result
    else:
        # Only the last HW tile can be partial; mask there and only there.
        t = pl.program_id(1)
        last = pl.num_programs(1) - 1

        @pl.when(t != last)
        def _():
            out_ref[...] = result

        @pl.when(t == last)
        def _():
            lane = lax.broadcasted_iota(jnp.int32, (1, tile), 1)
            valid = (t * tile_hw + lane) < hw
            out_ref[...] = jnp.where(valid, result, 0.0)


def _vmem_capacity_bytes():
    try:
        info = pltpu.get_tpu_info()
        cap = getattr(info, "vmem_capacity_bytes", None)
        if cap:
            return int(cap)
    except Exception:
        pass
    return 64 * 1024 * 1024  # conservative (v7x-sized) fallback


def cross_entropy_loss_2d(outputs, targets, *, max_tile_hw=32768):
    """outputs: (N, C, H, W) float; targets: (N, H, W) int class indices.

    Returns the scalar mean of
      -log_softmax(outputs, dim=1)[n, targets[n,h,w], h, w]
    matching nn.NLLLoss(weight=None, reduce=True, size_average=True) applied
    to F.log_softmax(outputs, dim=1).
    """
    n, c, h, w = outputs.shape
    hw = h * w
    p = n * hw

    # Free reshapes only -- no NCHW->NHWC transpose, no dtype cast in HBM.
    logits = outputs.reshape(n, c, hw)
    tgt = targets.reshape(n, 1, hw).astype(jnp.int32)

    dtype_bytes = jnp.dtype(outputs.dtype).itemsize

    # Generation-aware VMEM budget: ~48 MiB on v7x (64 MiB physical),
    # 64 MiB on v5e/v6e (128 MiB physical).
    vmem_cap = _vmem_capacity_bytes()
    vmem_limit = int(min(vmem_cap * 3 // 4, 64 * 1024 * 1024))

    # Per-lane VMEM cost: double-buffered logits/targets/output blocks plus
    # f32 intermediates (full C for the packed path, one chunk streamed).
    c_work = c if c <= _PACKED_CLASS_LIMIT else _CLASS_CHUNK
    per_lane = 2 * (c * dtype_bytes + 4 + 4) + 2 * c_work * 4
    headroom = max(vmem_limit - 2 * 1024 * 1024, 4 * 1024 * 1024)
    tile_cap = max(128, (headroom // per_lane) // 128 * 128)

    hw_pad = -(-hw // 128) * 128
    tile_hw = int(min(tile_cap, max_tile_hw, hw_pad))
    tile_hw = max(128, (tile_hw // 128) * 128)

    num_tiles = -(-hw // tile_hw)

    kernel = functools.partial(_ce_kernel, hw=hw, tile_hw=tile_hw)

    per_pixel = pl.pallas_call(
        kernel,
        out_shape=jax.ShapeDtypeStruct((n, 1, num_tiles * tile_hw),
                                       jnp.float32),
        grid_spec=pltpu.PrefetchScalarGridSpec(
            num_scalar_prefetch=0,
            grid=(n, num_tiles),
            in_specs=[
                pl.BlockSpec((None, c, tile_hw), lambda b, t: (b, 0, t)),
                pl.BlockSpec((None, 1, tile_hw), lambda b, t: (b, 0, t)),
            ],
            out_specs=pl.BlockSpec((None, 1, tile_hw), lambda b, t: (b, 0, t)),
        ),
        compiler_params=pltpu.CompilerParams(
            dimension_semantics=("parallel", "parallel"),
            vmem_limit_bytes=vmem_limit,
        ),
        cost_estimate=pl.CostEstimate(
            flops=6 * p * c,
            transcendentals=p * (c + 1),
            bytes_accessed=p * c * dtype_bytes + p * 4
            + n * num_tiles * tile_hw * 4,
        ),
    )(logits, tgt)

    # Tiny final reduction + mean in plain JAX (padding lanes are zero).
    return jnp.sum(per_pixel) / jnp.float32(p)


def _reference(outputs, targets):
    # pure-JAX reference for sanity checking
    logp = jax.nn.log_softmax(outputs.astype(jnp.float32), axis=1)  # (N,C,H,W)
    picked = jnp.take_along_axis(
        logp, targets[:, None, :, :].astype(jnp.int32), axis=1)
    return -jnp.mean(picked)


if __name__ == "__main__":
    key = jax.random.PRNGKey(0)
    k1, k2 = jax.random.split(key)

    N, C, H, W = 2, 4, 16, 16
    outputs = jax.random.normal(k1, (N, C, H, W), dtype=jnp.float32)
    targets = jax.random.randint(k2, (N, H, W), 0, C, dtype=jnp.int32)

    loss = cross_entropy_loss_2d(outputs, targets)
    jax.block_until_ready(loss)

    ref = _reference(outputs, targets)
    assert jnp.allclose(loss, ref, rtol=1e-5, atol=1e-5), (loss, ref)

    print("KERNEL_OK")
</pallas_src>

<mosaic_0001>
module attributes {stable_mosaic.version = 11 : i64} {
  func.func @_ce_kernel(%arg0: i32, %arg1: i32, %arg2: memref<1x4x256xf32, #tpu.memory_space<vmem>>, %arg3: memref<1x1x256xi32, #tpu.memory_space<vmem>>, %arg4: memref<1x1x256xf32, #tpu.memory_space<vmem>>) attributes {dimension_semantics = [#tpu.dimension_semantics<parallel>, #tpu.dimension_semantics<parallel>], iteration_bounds = array<i64: 2, 1>, scalar_prefetch = 0 : i64, scratch_operands = 0 : i64, tpu.core_type = #tpu.core_type<tc>, window_params = [{transform_indices = @transform_0, window_bounds = array<i64: 1, 4, 256>}, {transform_indices = @transform_1, window_bounds = array<i64: 1, 1, 256>}, {transform_indices = @transform_2, window_bounds = array<i64: 1, 1, 256>}]} {
    %c0 = arith.constant 0 : index
    %c0_0 = arith.constant 0 : index
    %c0_1 = arith.constant 0 : index
    %0 = vector.load %arg3[%c0, %c0_0, %c0_1] : memref<1x1x256xi32, #tpu.memory_space<vmem>>, vector<1x1x256xi32>
    %1 = vector.shape_cast %0 : vector<1x1x256xi32> to vector<1x256xi32>
    %c0_2 = arith.constant 0 : index
    %c0_3 = arith.constant 0 : index
    %c0_4 = arith.constant 0 : index
    %2 = vector.load %arg2[%c0_2, %c0_3, %c0_4] : memref<1x4x256xf32, #tpu.memory_space<vmem>>, vector<1x4x256xf32>
    %3 = vector.shape_cast %2 : vector<1x4x256xf32> to vector<4x256xf32>
    %cst = arith.constant dense<0xFF800000> : vector<256xf32>
    %4 = vector.multi_reduction <maximumf>, %3, %cst [0] : vector<4x256xf32> to vector<256xf32>
    %5 = vector.shape_cast %4 : vector<256xf32> to vector<1x256xf32>
    %6 = vector.broadcast %5 : vector<1x256xf32> to vector<4x256xf32>
    %7 = arith.subf %3, %6 : vector<4x256xf32>
    %8 = math.exp %7 : vector<4x256xf32>
    %cst_5 = arith.constant dense<0.000000e+00> : vector<256xf32>
    %9 = vector.multi_reduction <add>, %8, %cst_5 [0] : vector<4x256xf32> to vector<256xf32>
    %10 = vector.shape_cast %9 : vector<256xf32> to vector<1x256xf32>
    %11 = tpu.iota {dimensions = array<i32: 0>} : vector<4x256xi32>
    %12 = vector.broadcast %1 : vector<1x256xi32> to vector<4x256xi32>
    %13 = arith.cmpi eq, %11, %12 : vector<4x256xi32>
    %cst_6 = arith.constant 0.000000e+00 : f32
    %14 = vector.broadcast %cst_6 : f32 to vector<4x256xf32>
    %15 = arith.select %13, %3, %14 : vector<4x256xi1>, vector<4x256xf32>
    %cst_7 = arith.constant dense<0.000000e+00> : vector<256xf32>
    %16 = vector.multi_reduction <add>, %15, %cst_7 [0] : vector<4x256xf32> to vector<256xf32>
    %17 = vector.shape_cast %16 : vector<256xf32> to vector<1x256xf32>
    %18 = math.log %10 : vector<1x256xf32>
    %19 = arith.addf %5, %18 : vector<1x256xf32>
    %20 = arith.subf %19, %17 : vector<1x256xf32>
    %c0_8 = arith.constant 0 : index
    %c0_9 = arith.constant 0 : index
    %c0_10 = arith.constant 0 : index
    %21 = vector.load %arg4[%c0_8, %c0_9, %c0_10] : memref<1x1x256xf32, #tpu.memory_space<vmem>>, vector<1x1x256xf32>
    %22 = vector.shape_cast %21 : vector<1x1x256xf32> to vector<1x256xf32>
    %23 = vector.shape_cast %20 : vector<1x256xf32> to vector<1x1x256xf32>
    tpu.vector_store %arg4[%c0_8, %c0_9, %c0_10], %23 {strides = array<i32>} : memref<1x1x256xf32, #tpu.memory_space<vmem>>, vector<1x1x256xf32>,
    return
  }
  func.func @transform_0(%arg0: i32, %arg1: i32) -> (i32, i32, i32) {
    %c0_i32 = arith.constant 0 : i32
    %c0_i32_0 = arith.constant 0 : i32
    return %arg0, %c0_i32, %arg1 : i32, i32, i32
  }
  func.func @transform_1(%arg0: i32, %arg1: i32) -> (i32, i32, i32) {
    %c0_i32 = arith.constant 0 : i32
    %c0_i32_0 = arith.constant 0 : i32
    return %arg0, %c0_i32, %arg1 : i32, i32, i32
  }
  func.func @transform_2(%arg0: i32, %arg1: i32) -> (i32, i32, i32) {
    %c0_i32 = arith.constant 0 : i32
    %c0_i32_0 = arith.constant 0 : i32
    return %arg0, %c0_i32, %arg1 : i32, i32, i32
  }
}

</mosaic_0001>

<bundles_post_ra>
// kernel: tpu_custom_call.1
= control target key start
LH: loop header
LB: loop body
LE: loop exit
PB: predicated region body
PF: predicated region fallthrough
CT: control target
= control target key end

     0   :  { %7 = vsyncpa [#allocation3], 0  ;;  %s944_s0 = inlined_call_operand.hbm [shape: f32[2,4,256], index: 0, kind: input, shape index: {}]   ;;  %s945_s1 = inlined_call_operand.hbm [shape: s32[2,1,256], index: 1, kind: input, shape index: {}]   ;;  %s946_s2 = inlined_call_operand.hbm [shape: f32[2,1,256], index: 2, kind: output, shape index: {}]  }
   0x1   :  { %9 = vsyncpa [#allocation3 + $0x1], 0 }
   0x2   :  { %10 = vsyncpa [#allocation6], 0 }
   0x3   :  { %12 = vsyncpa [#allocation6 + $0x1], 0 }
   0x4   :  { %13 = vsyncpa [#allocation4], 0 }
   0x5   :  { %15 = vsyncpa [#allocation4 + $0x1], 0  ;;  %s717_s9 = smov 0   ;;  %s719_s10 = smov 0  }
   0x6   :  { %s721_s11 = smov 0   ;;  %s723_s12 = smov 0  }
   0x7   :  { %s725_s13 = smov 0   ;;  %s727_s14 = smov 0  }
   0x8 LB: > { %s453_s15 = sadd.s32 4294967295, %s696_s14   ;;  %s454_s16 = sadd.s32 4294967294, %s696_s14   ;;  %s696_s14 = sphi %s727_s14, %s21_s14   ;;  %s692_s13 = sphi %s725_s13, %s966_s13   ;;  %s688_s12 = sphi %s723_s12, %s965_s12   ;;  %s684_s11 = sphi %s721_s11, %s964_s11   ;;  %s680_s10 = sphi %s719_s10, %s963_s10   ;;  %s676_s9 = sphi %s717_s9, %s962_s9  }
   0x9   : > { %s33_s17 = sadd.s32 1, %s692_s13  ;;  %s42_s18 = sadd.s32 1, %s684_s11 }
   0xa   : > { %p35_p0 = scmp.ge.s32.totalorder %s33_s17, 2  ;;  %p49_p1 = scmp.ne.s32.totalorder %s684_s11, %s680_s10 }
   0xb   : > { %p50_p2 = scmp.eq.s32.totalorder %s696_s14, 0  ;;  %p55_p3 = scmp.ne.s32.totalorder %s680_s10, %s676_s9 }
   0xc   : > { %s968_s17 = smov (%p35_p0, %s33_s17), 0  ;;  %p56_p5 = scmp.eq.s32.totalorder %s453_s15, 0 }
   0xd   : > { %p758_p4 = por %p50_p2, %p49_p1  ;;  %s37_s20 = ssub.s32 %s692_s13, %s968_s17 }
   0xe   : > { %p109_p6 = scmp.eq.s32.totalorder %s453_s15, 1  ;;  %p40_p7 = scmp.eq.s32.totalorder %s37_s20, 0 }
   0xf   : > { %p764_p8 = por %p56_p5, %p55_p3  ;;  %p115_p10 = scmp.eq.s32.totalorder %s454_s16, 1 }
  0x10   : > { %p768_p9 = por %p109_p6, %p49_p1  ;;  %p492_p13 = scmp.lt.s32.totalorder %s696_s14, 2 }
  0x11   : > { %s950_s21 = scalar_select %p764_p8, 1, 0 }
  0x12   : > { %s951_s22 = scalar_select %p768_p9, 1, 0 }
  0x13   : > { %s773_s23 = scalar_select %p40_p7, %s684_s11, %s42_s18  }
  0x14   : > { %p775_p11 = por %p115_p10, %p55_p3  ;;  %s782_s25 = sand.u32 1, %s684_s11  }
  0x15   : > { %s457_s26 = sshll.u32 %s782_s25, 3  ;;  %s472_s27 = sshll.u32 %s692_s13, 7 }
  0x16   : > { %s952_s24 = scalar_select %p775_p11, 1, 0 }
  0x17   : > { %s789_s30 = scalar_lea.hbm %s944_s0, %s472_s27  ;;  %s139_s3 = scalar_lea.vmem [#allocation2], %s457_s26 }
  0x18   : > { %s149_s4 = sshll.u32 %s139_s3, 4  ;;  %p795_p0 = pnand %p492_p13, %p758_p4  ;;  %s791_s4 = int_to_ptr.vmem [resolvable:$true] %s149_s4 }
  0x19   : > { %s136_s6 = scalar_lea.sflag [#allocation3], %s782_s25  ;;  %s550_s7 = scalar_lea.hbm %s789_s30, 128 }
  0x1a   : > { %p551_p3 = scmp.ne.s32.totalorder %s789_s30, %s550_s7  ;;  %p552_p5 = pneg %p795_p0 }
  0x1b   : > { %s555_s16 = scalar_lea.hbm %s944_s0, 256  ;;  %p556_p4 = scmp.lt.u32.totalorder %s789_s30, %s944_s0 }
  0x1c   : > { %p553_p6 = pnand %p552_p5, %p551_p3  ;;  %p557_p10 = scmp.lt.u32.totalorder %s555_s16, %s550_s7 }
  0x1d   : > { %p559_p12 = scmp.lt.u32.totalorder %s550_s7, %s789_s30 }
  0x1e   : > { %p554_p7 = pneg %p553_p6  ;;  %p558_p13 = por %p557_p10, %p556_p4 }
  0x20   : > { %p560_p1 = por %p559_p12, %p558_p13 }
  0x22   : > { %p561_p2 = pnand %p560_p1, %p554_p7 }
  0x24   : > { %564 = shalt.err (!%p561_p2)
}
  0x25   : > { %s565_s20 = scalar_lea.vmem %s791_s4, 128  ;;  %s698_s26 = smov [#allocation2]  }
  0x26   : > { %p566_p3 = scmp.ne.s32.totalorder %s791_s4, %s565_s20  ;;  %s570_s27 = sshll.u32 %s698_s26, 4  ;;  %s571_s27 = int_to_ptr.vmem [resolvable:$false] %s570_s27 }
  0x27   : > { %s572_s28 = scalar_lea.vmem %s571_s27, 256  ;;  %p573_p9 = scmp.lt.s32.totalorder %s791_s4, %s571_s27 }
  0x28   : > { %p568_p6 = pnand %p566_p3, %p552_p5  ;;  %p574_p4 = scmp.lt.s32.totalorder %s572_s28, %s565_s20 }
  0x2a   : > { %p569_p11 = pneg %p568_p6  ;;  %p575_p10 = por %p574_p4, %p573_p9 }
  0x2c   : > { %p576_p12 = pnand %p575_p10, %p569_p11 }
  0x2e   : > { %579 = shalt.err (!%p576_p12)
}
  0x2f   : > { %484 = dma.hbm_to_vmem [thread:$0]  (!%p795_p0), %s789_s30, 128, %s791_s4, %s136_s6  }
  0x30   : > { %p954_p1 = scmp.lt.s32.totalorder %s696_s14, 3  ;;  %p955_p2 = scmp.ge.s32.totalorder %s696_s14, 1 }
  0x31   : > { %s460_s3 = sshll.u32 %s782_s25, 1  ;;  %s473_s7 = sshll.u32 %s692_s13, 5 }
  0x32   : > { %p831_p7 = pnand %p955_p2, %p954_p1  ;;  %s840_s16 = scalar_lea.hbm %s945_s1, %s473_s7 }
  0x33   : > { %s160_s18 = scalar_lea.vmem [#allocation5], %s460_s3  ;;  %s157_s30 = scalar_lea.sflag [#allocation6], %s782_s25 }
  0x34   : > { %s956_s29 = scalar_select %p831_p7, 1, 0 }
  0x35   : > { %s170_s19 = sshll.u32 %s160_s18, 4  ;;  %s580_s4 = scalar_lea.hbm %s840_s16, 32  ;;  %s171_s19 = int_to_ptr.vmem [resolvable:$true] %s170_s19 }
  0x36   : > { %p581_p9 = scmp.ne.s32.totalorder %s840_s16, %s580_s4  ;;  %s585_s26 = scalar_lea.hbm %s945_s1, 64 }
  0x37   : > { %p586_p3 = scmp.lt.u32.totalorder %s840_s16, %s945_s1  ;;  %p587_p6 = scmp.lt.u32.totalorder %s585_s26, %s580_s4 }
  0x38   : > { %p583_p11 = pnand %p581_p9, %p552_p5  ;;  %p589_p10 = scmp.lt.u32.totalorder %s580_s4, %s840_s16 }
  0x39   : > { %p588_p4 = por %p587_p6, %p586_p3 }
  0x3a   : > { %p584_p13 = pneg %p583_p11 }
  0x3b   : > { %p590_p12 = por %p589_p10, %p588_p4 }
  0x3d   : > { %p591_p1 = pnand %p590_p12, %p584_p13 }
  0x3f   : > { %594 = shalt.err (!%p591_p1)
}
  0x40   : > { %s595_s25 = scalar_lea.vmem %s171_s19, 32  ;;  %s699_s3 = smov [#allocation5]  }
  0x41   : > { %p596_p2 = scmp.ne.s32.totalorder %s171_s19, %s595_s25  ;;  %s600_s7 = sshll.u32 %s699_s3, 4  ;;  %s601_s7 = int_to_ptr.vmem [resolvable:$false] %s600_s7 }
  0x42   : > { %s602_s8 = scalar_lea.vmem %s601_s7, 64  ;;  %p603_p8 = scmp.lt.s32.totalorder %s171_s19, %s601_s7 }
  0x43   : > { %p598_p9 = pnand %p596_p2, %p552_p5  ;;  %p604_p7 = scmp.lt.s32.totalorder %s602_s8, %s595_s25 }
  0x45   : > { %p599_p11 = pneg %p598_p9  ;;  %p605_p3 = por %p604_p7, %p603_p8 }
  0x47   : > { %p606_p6 = pnand %p605_p3, %p599_p11 }
  0x49   : > { %609 = shalt.err (!%p606_p6)
}
  0x4a   : > { %487 = dma.hbm_to_vmem [thread:$0]  (!%p795_p0), %s840_s16, 32, %s171_s19, %s157_s30  }
  0x4b   : > { %p957_p13 = scmp.ne.s32.totalorder %s956_s29, 0 }
  0x4c   : > { %s865_s15 = sand.u32 (!%p957_p13), 1, %s680_s10   ;;  %p958_p5 = scmp.ne.s32.totalorder (!%p957_p13), %s950_s21, 0 }
  0x4d   : > { %179 = sbr.rel (%p957_p13) target bundleno = 173 (0xad), region = 28  ;;  %s464_s18 = sshll.u32 (!%p957_p13), %s865_s15, 3 }
  0x4e   : > { %s182_s4 = scalar_lea.sflag (!%p957_p13), [#allocation3], %s865_s15  ;;  %s185_s6 = scalar_lea.vmem (!%p957_p13), [#allocation2], %s464_s18 }
  0x54   : > { %663 = dma.done.wait (%p958_p5), %s182_s4, 128  }
  0x55   : > { %665 = vsyncadd (%p958_p5), %s182_s4, 4294967168  ;;  %s465_s5 = sshll.u32 %s865_s15, 1  ;;  %s191_s29 = scalar_lea.sflag [#allocation6], %s865_s15 }
  0x56   : > { %s194_s16 = scalar_lea.vmem [#allocation5], %s465_s5 }
  0x57   : > { %667 = dma.done.wait (%p958_p5), %s191_s29, 32  }
  0x58   : > { %669 = vsyncadd (%p958_p5), %s191_s29, 4294967264  ;;  %vm228_vm0 = vcmask 1043456   ;;  %v224_v0 = vld [vmem:[%s185_s6] sm:$0xff]  ;;  %v267_v15 = vlaneseq  ;;  %v223_v22 = vld [vmem:[%s194_s16] sm:$0x3]  ;;  %s219_s21 = scalar_lea.vmem [#allocation7], %s465_s5 }
  0x59   : > { %v226_v1 = vcombine.high %v224_v0, %v224_v0  ;;  %v229_v2 = vsel %vm228_vm0, %v224_v0, -inf  ;;  %v700_v56 = vmov 1966171168   ;;  %s343_s19 = sshll.u32 %s219_s21, 4  ;;  %s474_s30 = sshll.u32 %s688_s12, 5  ;;  %s892_s19 = int_to_ptr.vmem [resolvable:$true] %s343_s19 }
  0x5a   : > { %v230_v3 = vrot.slane %v229_v2, 4  ;;  %v268_v18 = vshrl.u32 %v267_v15, 7  ;;  %v307_v57 = vunpack.c.l.s4 %v700_v56  ;;  %vm323_vm3 = vcmp.lt.s32.totalorder %v267_v15, 256  ;;  %s897_s27 = scalar_lea.hbm %s946_s2, %s474_s30  ;;  %s327_s28 = scalar_lea.sflag [#allocation4], %s865_s15 }
  0x5b   : > { %v236_v4 = vsel %vm228_vm0, %v226_v1, -inf  ;;  %s610_s25 = scalar_lea.vmem %s892_s19, 32  ;;  %p959_p0 = scmp.ne.s32.totalorder %s951_s22, 0 }
  0x5c   : > { %v231_v5 = vmax.f32 %v229_v2, %v230_v3  ;;  %v237_v6 = vrot.slane %v236_v4, 4  ;;  %v271_v21 = vsub.s32 0, %v268_v18  ;;  %v275_v23 = vsub.s32 1, %v268_v18  ;;  %p611_p8 = scmp.ne.s32.totalorder %s892_s19, %s610_s25  ;;  %s701_s12 = smov [#allocation7]  }
  0x5d   : > { %s614_s3 = sshll.u32 %s701_s12, 4  ;;  %s615_s3 = int_to_ptr.vmem [resolvable:$false] %s614_s3 }
  0x5e   : > { %v232_v7 = vrot.slane %v231_v5, 2  ;;  %v238_v8 = vmax.f32 %v236_v4, %v237_v6  ;;  %v272_v24 = vrot.slane %v223_v22, %v271_v21  ;;  %v276_v25 = vrot.slane %v223_v22, %v275_v23  ;;  %p612_p7 = pnand %p611_p8, %p959_p0  ;;  %s616_s7 = scalar_lea.vmem %s615_s3, 64 }
  0x5f   : > { %p617_p10 = scmp.lt.s32.totalorder %s892_s19, %s615_s3  ;;  %p618_p12 = scmp.lt.s32.totalorder %s616_s7, %s610_s25 }
  0x60   : > { %v233_v9 = vmax.f32 %v231_v5, %v232_v7  ;;  %v239_v10 = vrot.slane %v238_v8, 2  ;;  %vm277_vm1 = vcmp.eq.s32.totalorder %v268_v18, %v272_v24  ;;  %vm278_vm2 = vcmp.eq.s32.totalorder %v268_v18, %v276_v25  ;;  %p613_p4 = pneg %p612_p7 }
  0x61   : > { %v279_v26 = vsel %vm277_vm1, %v224_v0, 0.0  ;;  %v280_v30 = vsel %vm278_vm2, %v226_v1, 0.0  ;;  %v308_v1 = vunpack.c.0.s8 %v307_v57  ;;  %p619_p1 = por %p618_p12, %p617_p10 }
  0x62   : > { %v234_v11 = vrot.slane %v233_v9, 1  ;;  %v240_v12 = vmax.f32 %v238_v8, %v239_v10  ;;  %v281_v32 = vsel %vm228_vm0, %v279_v26, 0.0  ;;  %v288_v36 = vsel %vm228_vm0, %v280_v30, 0.0 }
  0x63   : > { %v282_v37 = vrot.slane %v281_v32, 4  ;;  %v289_v40 = vrot.slane %v288_v36, 4  ;;  %v311_v5 = vsub.s32 %v308_v1, %v268_v18  ;;  %p620_p2 = pnand %p619_p1, %p613_p4 }
  0x64   : > { %v235_v13 = vmax.f32 %v233_v9, %v234_v11  ;;  %v241_v14 = vrot.slane %v240_v12, 1 }
  0x65   : > { %v283_v43 = vadd.f32 %v282_v37, %v281_v32  ;;  %v290_v46 = vadd.f32 %v289_v40, %v288_v36 }
  0x66   : > { %v242_v16 = vmax.f32 %v240_v12, %v241_v14 }
  0x67   : > { %v284_v49 = vrot.slane %v283_v43, 2  ;;  %v291_v51 = vrot.slane %v290_v46, 2 }
  0x68   : > { %v245_v17 = vcombine.low %v235_v13, %v242_v16 }
  0x69   : > { %v285_v52 = vadd.f32 %v284_v49, %v283_v43  ;;  %v292_v53 = vadd.f32 %v291_v51, %v290_v46 }
  0x6a   : > { %v247_v19 = vsub.f32 %v224_v0, %v245_v17 }
  0x6b   : > { %v286_v54 = vrot.slane %v285_v52, 1  ;;  %v293_v55 = vrot.slane %v292_v53, 1 }
  0x6c   : > { %v248_v20 = vmul.f32 1.442695, %v247_v19 }
  0x6d   : > { %v287_v59 = vadd.f32 %v286_v54, %v285_v52  ;;  %v294_v62 = vadd.f32 %v293_v55, %v292_v53 }
  0x6e   : > { %544 = vpow2.f32 %v248_v20 }
  0x78   : > { %v545_v27 = vpop.eup %544 }
  0x79   : > { %v251_v28 = vcombine.high %v545_v27, %v545_v27  ;;  %v253_v29 = vsel %vm228_vm0, %v545_v27, 0.0 }
  0x7a   : > { %v254_v31 = vrot.slane %v253_v29, 4 }
  0x7b   : > { %v260_v33 = vsel %vm228_vm0, %v251_v28, 0.0 }
  0x7c   : > { %v255_v34 = vadd.f32 %v254_v31, %v253_v29  ;;  %v261_v35 = vrot.slane %v260_v33, 4 }
  0x7e   : > { %v256_v38 = vrot.slane %v255_v34, 2  ;;  %v262_v39 = vadd.f32 %v261_v35, %v260_v33 }
  0x80   : > { %v257_v41 = vadd.f32 %v256_v38, %v255_v34  ;;  %v263_v42 = vrot.slane %v262_v39, 2 }
  0x82   : > { %v258_v44 = vrot.slane %v257_v41, 1  ;;  %v264_v45 = vadd.f32 %v263_v42, %v262_v39 }
  0x84   : > { %v259_v47 = vadd.f32 %v258_v44, %v257_v41  ;;  %v265_v48 = vrot.slane %v264_v45, 1 }
  0x86   : > { %v266_v50 = vadd.f32 %v265_v48, %v264_v45  ;;  %546 = vlog2.f32 %v259_v47 }
  0x88   : > { %548 = vlog2.f32 %v266_v50 }
  0x90   : > { %v547_v58 = vpop.eup %546 }
  0x91   : > { %v296_v60 = vmul.f32 0.6931472, %v547_v58 }
  0x92   : > { %v549_v61 = vpop.eup %548 }
  0x93   : > { %v298_v63 = vmul.f32 0.6931472, %v549_v61  ;;  %v299_v0 = vadd.f32 %v296_v60, %v235_v13 }
  0x95   : > { %v300_v2 = vadd.f32 %v298_v63, %v242_v16  ;;  %v301_v3 = vsub.f32 %v299_v0, %v287_v59 }
  0x97   : > { %v302_v4 = vsub.f32 %v300_v2, %v294_v62 }
  0x99   : > { %v305_v6 = vcombine.low %v301_v3, %v302_v4 }
  0x9b   : > { %v312_v7 = vrot.slane %v305_v6, %v311_v5 }
  0x9d   : > { %v319_v8 = vrot.slane %v312_v7, %v311_v5 }
  0x9f   : > { %325 = vst.msk [vmem:[%s219_s21] sm:$0x3] %vm323_vm3, %v319_v8 }
  0xa0   : > { %623 = shalt.err (!%p620_p2)
}
  0xa1   : > { %s624_s8 = scalar_lea.hbm %s897_s27, 32  ;;  %s628_s4 = scalar_lea.hbm %s946_s2, 64 }
  0xa2   : > { %p625_p9 = scmp.ne.s32.totalorder %s897_s27, %s624_s8  ;;  %p629_p6 = scmp.lt.u32.totalorder %s897_s27, %s946_s2 }
  0xa3   : > { %p630_p13 = scmp.lt.u32.totalorder %s628_s4, %s624_s8  ;;  %p632_p8 = scmp.lt.u32.totalorder %s624_s8, %s897_s27 }
  0xa4   : > { %p626_p11 = pnand %p625_p9, %p959_p0 }
  0xa5   : > { %p631_p5 = por %p630_p13, %p629_p6 }
  0xa6   : > { %p627_p3 = pneg %p626_p11 }
  0xa7   : > { %p633_p7 = por %p632_p8, %p631_p5 }
  0xa9   : > { %p634_p4 = pnand %p633_p7, %p627_p3 }
  0xab   : > { %637 = shalt.err (!%p634_p4)
}
  0xac   : > { %479 = dma.vmem_to_hbm [thread:$0]  (%p959_p0), %s892_s19, 32, %s897_s27, %s327_s28  }
  0xad PF: > { %s355_s29 = sand.u32 1, %s676_s9   ;;  %p960_p10 = scmp.ne.s32.totalorder %s952_s24, 0 }
  0xae   : > { %p961_p12 = scmp.ge.s32.totalorder %s696_s14, 2  ;;  %s356_s16 = scalar_lea.sflag [#allocation4], %s355_s29 }
  0xb0   : > { %p489_p1 = pnand %p961_p12, %p960_p10 }
  0xb2   : > { %671 = dma.done.wait (!%p489_p1), %s356_s16, 32  }
  0xb3   : > { %673 = vsyncadd (!%p489_p1), %s356_s16, 4294967264  ;;  %s21_s14 = sadd.s32 1, %s696_s14   ;;  %s962_s9 = smov %s680_s10 }
  0xb4   : > { %p18_p2 = scmp.ge.s32.totalorder %s21_s14, 4   ;;  %s963_s10 = smov %s684_s11 }
  0xb5   : > { %s964_s11 = smov %s773_s23  ;;  %s965_s12 = smov %s692_s13 }
  0xb6   : > { %s966_s13 = smov %s968_s17  ;;  %20 = sbr.rel (!%p18_p2) target bundleno = 8 (0x8), region = 86 }
  0xbd   :  { %361 = vsyncpa [#allocation3], 1 }
  0xbe   :  { %363 = vsyncpa [#allocation3 + $0x1], 1 }
  0xbf   :  { %364 = vsyncpa [#allocation6], 1 }
  0xc0   :  { %366 = vsyncpa [#allocation6 + $0x1], 1 }
  0xc1   :  { %367 = vsyncpa [#allocation4], 1 }
  0xc2   :  { %369 = vsyncpa [#allocation4 + $0x1], 1 }

</bundles_post_ra>
